<compile_context>
chip_gen: v6e
topology: v6e:2x2x1
jax: 0.10.0
libtpu: 0.0.40
codegen_flags: <defaults>
</compile_context>

<pallas_src>
import jax
import jax.numpy as jnp
from jax.experimental import pallas as pl
from jax.experimental.pallas import tpu as pltpu


def _make_graph_conv_kernel(normalize):
    def kernel(x_ref, adj_ref, wblk_ref, b_ref, o_ref):
        # x_ref:    (1, N, BT_TILE*C)   node-major slab of BT_TILE graph slices
        # adj_ref:  (N, N)
        # wblk_ref: (BT_TILE*C, BT_TILE*D) = kron(I_BT_TILE, W)
        # b_ref:    (1, BT_TILE*D)      bias tiled BT_TILE times along lanes
        # o_ref:    (1, N, BT_TILE*D)
        xt = x_ref[0]                                                   # [N, BT*C]
        yt = jnp.dot(adj_ref[...], xt, preferred_element_type=jnp.float32)   # [N, BT*C]
        zt = jnp.dot(yt, wblk_ref[...], preferred_element_type=jnp.float32)  # [N, BT*D]
        zt = zt + b_ref[...]
        if normalize:
            # F.normalize(p=2, dim=1): L2 norm over the node axis (axis 0 here),
            # independently for every (bt, d) lane column.
            ss = jnp.sum(zt * zt, axis=0, keepdims=True)                # [1, BT*D]
            zt = zt * jax.lax.rsqrt(jnp.maximum(ss, 1e-24))             # == z / max(||z||, 1e-12)
        o_ref[0] = zt
    return kernel


def graph_conv(x, adj, weight, bias, normalize_embedding=True, num_tiles=None):
    """x: [B, T, N, C_in], adj: [N, N], weight: [C_in, D], bias: [D] or None."""
    B, T, N, C = x.shape
    D = weight.shape[1]
    BT = B * T

    if num_tiles is None:
        # Keep >=2 parallel grid steps when possible so v7x's 2 TensorCores both
        # get work; a single step is fine (and optimal) on v5e/v6e.
        num_tiles = 2 if (BT >= 2 and BT % 2 == 0) else 1
    assert BT % num_tiles == 0, "B*T must divide evenly into grid tiles"
    bt_tile = BT // num_tiles

    f32 = jnp.float32
    adj = adj.astype(f32)
    weight = weight.astype(f32)
    if bias is None:
        bias = jnp.zeros((D,), f32)
    bias = bias.astype(f32)

    # Pack x: [B,T,N,C] -> [num_tiles, N, bt_tile*C]  (node-major, (bt,c) on lanes)
    x_packed = (
        x.astype(f32)
        .reshape(num_tiles, bt_tile, N, C)
        .transpose(0, 2, 1, 3)
        .reshape(num_tiles, N, bt_tile * C)
    )
    # Block-diagonal weight: applies W to each of the bt_tile slices at once.
    w_block = jnp.kron(jnp.eye(bt_tile, dtype=f32), weight)      # [bt_tile*C, bt_tile*D]
    # Bias tiled to match the (bt, d) lane layout.
    b_tiled = jnp.tile(bias, bt_tile).reshape(1, bt_tile * D)    # [1, bt_tile*D]

    kernel = _make_graph_conv_kernel(normalize_embedding)

    out = pl.pallas_call(
        kernel,
        out_shape=jax.ShapeDtypeStruct((num_tiles, N, bt_tile * D), f32),
        grid_spec=pltpu.PrefetchScalarGridSpec(
            num_scalar_prefetch=0,
            grid=(num_tiles,),
            in_specs=[
                pl.BlockSpec((1, N, bt_tile * C), lambda i: (i, 0, 0)),       # x slab
                pl.BlockSpec((N, N), lambda i: (0, 0)),                       # adj (shared)
                pl.BlockSpec((bt_tile * C, bt_tile * D), lambda i: (0, 0)),   # kron(I, W)
                pl.BlockSpec((1, bt_tile * D), lambda i: (0, 0)),             # tiled bias
            ],
            out_specs=pl.BlockSpec((1, N, bt_tile * D), lambda i: (i, 0, 0)),
        ),
        compiler_params=pltpu.CompilerParams(
            dimension_semantics=("parallel",)),
    )(x_packed, adj, w_block, b_tiled)

    # Unpack: [num_tiles, N, bt_tile*D] -> [B, T, N, D]
    out = (
        out.reshape(num_tiles, N, bt_tile, D)
        .transpose(0, 2, 1, 3)
        .reshape(B, T, N, D)
    )
    return out


def graph_conv_ref(x, adj, weight, bias):
    B, T, N, C = x.shape
    D = weight.shape[1]
    x2 = x.reshape(B * T, N, C)
    y = jnp.einsum("nm,bmc->bnc", adj, x2)
    y = jnp.einsum("bnc,cd->bnd", y, weight) + bias[None, None, :]
    norm = jnp.maximum(jnp.sqrt(jnp.sum(y * y, axis=1, keepdims=True)), 1e-12)
    y = y / norm
    return y.reshape(B, T, N, D)


if __name__ == "__main__":
    key = jax.random.PRNGKey(0)
    k_x, k_adj, k_w, k_b = jax.random.split(key, 4)

    B, T, N, C_in, D_out = 2, 8, 16, 4, 32

    x = jax.random.normal(k_x, (B, T, N, C_in), dtype=jnp.float32)
    adj = jax.random.uniform(k_adj, (N, N), dtype=jnp.float32)
    weight = jax.random.normal(k_w, (C_in, D_out), dtype=jnp.float32) * 0.1
    bias = jax.random.normal(k_b, (D_out,), dtype=jnp.float32) * 0.1

    out = graph_conv(x, adj, weight, bias)
    out = jax.block_until_ready(out)

    ref = graph_conv_ref(x, adj, weight, bias)
    assert out.shape == (B, T, N, D_out)
    assert jnp.allclose(out, ref, atol=1e-5, rtol=1e-5), "mismatch vs reference"

    print("KERNEL_OK")
</pallas_src>

<mosaic_0001>
module attributes {stable_mosaic.version = 11 : i64} {
  func.func @kernel(%arg0: i32, %arg1: memref<1x16x32xf32, #tpu.memory_space<vmem>>, %arg2: memref<16x16xf32, #tpu.memory_space<vmem>>, %arg3: memref<32x256xf32, #tpu.memory_space<vmem>>, %arg4: memref<1x256xf32, #tpu.memory_space<vmem>>, %arg5: memref<1x16x256xf32, #tpu.memory_space<vmem>>) attributes {dimension_semantics = [#tpu.dimension_semantics<parallel>], iteration_bounds = array<i64: 2>, scalar_prefetch = 0 : i64, scratch_operands = 0 : i64, tpu.core_type = #tpu.core_type<tc>, window_params = [{transform_indices = @transform_0, window_bounds = array<i64: 1, 16, 32>}, {pipeline_mode = #tpu.pipeline_mode<synchronous>, transform_indices = @transform_1, window_bounds = array<i64: 16, 16>}, {pipeline_mode = #tpu.pipeline_mode<synchronous>, transform_indices = @transform_2, window_bounds = array<i64: 32, 256>}, {pipeline_mode = #tpu.pipeline_mode<synchronous>, transform_indices = @transform_3, window_bounds = array<i64: 1, 256>}, {transform_indices = @transform_4, window_bounds = array<i64: 1, 16, 256>}]} {
    %c0 = arith.constant 0 : index
    %c0_0 = arith.constant 0 : index
    %c0_1 = arith.constant 0 : index
    %0 = vector.load %arg1[%c0, %c0_0, %c0_1] : memref<1x16x32xf32, #tpu.memory_space<vmem>>, vector<1x16x32xf32>
    %1 = vector.shape_cast %0 : vector<1x16x32xf32> to vector<16x32xf32>
    %c0_2 = arith.constant 0 : index
    %c0_3 = arith.constant 0 : index
    %2 = vector.load %arg2[%c0_2, %c0_3] : memref<16x16xf32, #tpu.memory_space<vmem>>, vector<16x16xf32>
    %cst = arith.constant dense<0.000000e+00> : vector<16x32xf32>
    %3 = tpu.matmul %2, %1, %cst {dimension_numbers = #tpu.dot_dimension_numbers<[1], [0], [0], [1], [0, 0, 1, 1], [], []>} : vector<16x16xf32>, vector<16x32xf32>, vector<16x32xf32> -> vector<16x32xf32>
    %c0_4 = arith.constant 0 : index
    %c0_5 = arith.constant 0 : index
    %4 = vector.load %arg3[%c0_4, %c0_5] : memref<32x256xf32, #tpu.memory_space<vmem>>, vector<32x256xf32>
    %cst_6 = arith.constant dense<0.000000e+00> : vector<16x256xf32>
    %5 = tpu.matmul %3, %4, %cst_6 {dimension_numbers = #tpu.dot_dimension_numbers<[1], [0], [0], [1], [0, 0, 1, 1], [], []>} : vector<16x32xf32>, vector<32x256xf32>, vector<16x256xf32> -> vector<16x256xf32>
    %c0_7 = arith.constant 0 : index
    %c0_8 = arith.constant 0 : index
    %6 = vector.load %arg4[%c0_7, %c0_8] : memref<1x256xf32, #tpu.memory_space<vmem>>, vector<1x256xf32>
    %7 = vector.broadcast %6 : vector<1x256xf32> to vector<16x256xf32>
    %8 = arith.addf %5, %7 : vector<16x256xf32>
    %9 = arith.mulf %8, %8 : vector<16x256xf32>
    %cst_9 = arith.constant dense<0.000000e+00> : vector<256xf32>
    %10 = vector.multi_reduction <add>, %9, %cst_9 [0] : vector<16x256xf32> to vector<256xf32>
    %11 = vector.shape_cast %10 : vector<256xf32> to vector<1x256xf32>
    %cst_10 = arith.constant 1.000000e-24 : f32
    %12 = vector.broadcast %cst_10 : f32 to vector<1x256xf32>
    %13 = arith.maximumf %11, %12 : vector<1x256xf32>
    %14 = math.rsqrt %13 : vector<1x256xf32>
    %15 = vector.broadcast %14 : vector<1x256xf32> to vector<16x256xf32>
    %16 = arith.mulf %8, %15 : vector<16x256xf32>
    %c0_11 = arith.constant 0 : index
    %c0_12 = arith.constant 0 : index
    %c0_13 = arith.constant 0 : index
    %17 = vector.load %arg5[%c0_11, %c0_12, %c0_13] : memref<1x16x256xf32, #tpu.memory_space<vmem>>, vector<1x16x256xf32>
    %18 = vector.shape_cast %17 : vector<1x16x256xf32> to vector<16x256xf32>
    %19 = vector.shape_cast %16 : vector<16x256xf32> to vector<1x16x256xf32>
    tpu.vector_store %arg5[%c0_11, %c0_12, %c0_13], %19 {strides = array<i32>} : memref<1x16x256xf32, #tpu.memory_space<vmem>>, vector<1x16x256xf32>,
    return
  }
  func.func @transform_0(%arg0: i32) -> (i32, i32, i32) {
    %c0_i32 = arith.constant 0 : i32
    %c0_i32_0 = arith.constant 0 : i32
    %c0_i32_1 = arith.constant 0 : i32
    return %arg0, %c0_i32, %c0_i32_0 : i32, i32, i32
  }
  func.func @transform_1(%arg0: i32) -> (i32, i32) {
    %c0_i32 = arith.constant 0 : i32
    %c0_i32_0 = arith.constant 0 : i32
    %c0_i32_1 = arith.constant 0 : i32
    return %c0_i32, %c0_i32_0 : i32, i32
  }
  func.func @transform_2(%arg0: i32) -> (i32, i32) {
    %c0_i32 = arith.constant 0 : i32
    %c0_i32_0 = arith.constant 0 : i32
    %c0_i32_1 = arith.constant 0 : i32
    return %c0_i32, %c0_i32_0 : i32, i32
  }
  func.func @transform_3(%arg0: i32) -> (i32, i32) {
    %c0_i32 = arith.constant 0 : i32
    %c0_i32_0 = arith.constant 0 : i32
    %c0_i32_1 = arith.constant 0 : i32
    return %c0_i32, %c0_i32_0 : i32, i32
  }
  func.func @transform_4(%arg0: i32) -> (i32, i32, i32) {
    %c0_i32 = arith.constant 0 : i32
    %c0_i32_0 = arith.constant 0 : i32
    %c0_i32_1 = arith.constant 0 : i32
    return %arg0, %c0_i32, %c0_i32_0 : i32, i32, i32
  }
}

</mosaic_0001>

<bundles_post_ra>
// kernel: tpu_custom_call.1
= control target key start
LH: loop header
LB: loop body
LE: loop exit
PB: predicated region body
PF: predicated region fallthrough
CT: control target
= control target key end

     0   :  { %9 = vsyncpa [#allocation3], 0  ;;  %s1070_s0 = inlined_call_operand.hbm [shape: f32[2,16,32], index: 0, kind: input, shape index: {}]   ;;  %s1071_s1 = inlined_call_operand.hbm [shape: f32[16,16], index: 1, kind: input, shape index: {}]   ;;  %s1072_s2 = inlined_call_operand.hbm [shape: f32[32,256], index: 2, kind: input, shape index: {}]   ;;  %s1073_s3 = inlined_call_operand.vmem [shape: f32[1,256], index: 3, kind: input, shape index: {}]   ;;  %s1074_s4 = inlined_call_operand.hbm [shape: f32[2,16,256], index: 4, kind: output, shape index: {}]  }
   0x1   :  { %11 = vsyncpa [#allocation3 + $0x1], 0 }
   0x2   :  { %12 = vsyncpa [#allocation6], 0 }
   0x3   :  { %13 = vsyncpa [#allocation4], 0 }
   0x4   :  { %15 = vsyncpa [#allocation4 + $0x1], 0  ;;  %s870_s15 = smov 0   ;;  %s872_s16 = smov 0  }
   0x5   :  { %s874_s17 = smov 0   ;;  %s876_s18 = smov 0  }
   0x6 LB: > { %s891_s19 = sadd.s32 4294967295, %s832_s18   ;;  %s571_s20 = sadd.s32 4294967294, %s832_s18   ;;  %s832_s18 = sphi %s876_s18, %s1095_s18   ;;  %s828_s17 = sphi %s874_s17, %s1094_s17   ;;  %s824_s16 = sphi %s872_s16, %s1093_s16   ;;  %s820_s15 = sphi %s870_s15, %s1092_s15  }
   0x7   : > { %p41_p0 = scmp.ne.s32.totalorder %s824_s16, %s820_s15  ;;  %p1075_p1 = scmp.eq.s32.totalorder %s891_s19, 0 }
   0x8   : > { %p128_p2 = scmp.eq.s32.totalorder %s891_s19, 1  ;;  %p134_p3 = scmp.eq.s32.totalorder %s571_s20, 1 }
   0x9   : > { %p900_p4 = por %p1075_p1, %p41_p0  ;;  %p572_p5 = scmp.ge.s32.totalorder %s832_s18, 1 }
   0xa   : > { %p905_p6 = por %p134_p3, %p41_p0  ;;  %p141_p7 = scmp.lt.s32.totalorder %s832_s18, 3 }
   0xb   : > { %s1079_s21 = scalar_select %p900_p4, 1, 0 }
   0xc   : > { %s1080_s22 = scalar_select %p905_p6, 1, 0 }
   0xd   : > { %p910_p8 = pnand %p572_p5, %p141_p7  ;;  %s834_s24 = smov [#allocation5]  }
   0xe   : > { %s153_s25 = sshll.u32 %s834_s24, 4  ;;  %s835_s27 = smov [#allocation7]   ;;  %s154_s25 = int_to_ptr.vmem [resolvable:$true] %s153_s25 }
   0xf   : > { %s1081_s23 = scalar_select %p910_p8, 1, 0 }
  0x10   : > { %p618_p9 = pneg %p910_p8  ;;  %s166_s28 = sshll.u32 %s835_s27, 4  ;;  %s167_s28 = int_to_ptr.vmem [resolvable:$true] %s166_s28 }
  0x11   : > { %s695_s29 = scalar_lea.vmem %s154_s25, 256  ;;  %p703_p5 = scmp.lt.s32.totalorder %s154_s25, %s154_s25 }
  0x12   : > { %p919_p11 = pnand %p618_p9, %p1075_p1  ;;  %p696_p13 = scmp.ne.s32.totalorder %s154_s25, %s695_s29 }
  0x13   : > { %p704_p7 = scmp.lt.s32.totalorder %s695_s29, %s695_s29 }
  0x14   : > { %p686_p12 = pneg %p919_p11 }
  0x15   : > { %p705_p10 = por %p704_p7, %p703_p5 }
  0x16   : > { %p698_p0 = pnand %p696_p13, %p686_p12 }
  0x18   : > { %p699_p3 = pneg %p698_p0 }
  0x1a   : > { %p706_p9 = pnand %p705_p10, %p699_p3 }
  0x1c   : > { %709 = shalt.err (!%p706_p9)
}
  0x1d   : > { %s836_s30 = smov 128   ;;  %s837_s5 = smov 8  }
  0x1e   : > { %621 = dma.hbm_to_vmem [thread:$0]  (!%p919_p11), %s1071_s1, 256, %s154_s25, [#allocation6], %s836_s30, %s836_s30, %s837_s5  }
  0x1f   : > { %s721_s8 = scalar_lea.vmem %s167_s28, 1024  ;;  %p729_p10 = scmp.lt.s32.totalorder %s167_s28, %s167_s28 }
  0x20   : > { %p722_p13 = scmp.ne.s32.totalorder %s167_s28, %s721_s8  ;;  %p730_p3 = scmp.lt.s32.totalorder %s721_s8, %s721_s8 }
  0x22   : > { %p724_p0 = pnand %p722_p13, %p686_p12  ;;  %p731_p7 = por %p730_p3, %p729_p10 }
  0x24   : > { %p725_p5 = pneg %p724_p0 }
  0x26   : > { %p732_p9 = pnand %p731_p7, %p725_p5 }
  0x28   : > { %735 = shalt.err (!%p732_p9)
}
  0x29   : > { %s838_s9 = smov 256   ;;  %s839_s10 = smov 16  }
  0x2a   : > { %624 = dma.hbm_to_vmem [thread:$0]  (!%p919_p11), %s1072_s2, 1024, %s167_s28, [#allocation6], %s838_s9, %s838_s9, %s839_s10  }
  0x2b   : > { %s945_s13 = sadd.s32 1, %s832_s18   ;;  %s28_s20 = sadd.s32 1, %s828_s17 }
  0x2c   : > { %s25_s14 = ssub.s32 %s832_s18, %s945_s13  ;;  %p35_p13 = scmp.ne.s32.totalorder %s828_s17, %s824_s16 }
  0x2d   : > { %p26_p12 = scmp.eq.s32.totalorder %s25_s14, 0  ;;  %p36_p0 = scmp.eq.s32.totalorder %s832_s18, 0 }
  0x2e   : > { %p958_p10 = por %p128_p2, %p35_p13  ;;  %p635_p3 = scmp.lt.s32.totalorder %s832_s18, 2 }
  0x2f   : > { %s954_s24 = scalar_select %p26_p12, %s828_s17, %s28_s20  }
  0x30   : > { %p37_p5 = por %p36_p0, %p35_p13  ;;  %s183_s26 = sand.u32 1, %s828_s17  }
  0x31   : > { %s1083_s25 = scalar_select %p958_p10, 1, 0 }
  0x32   : > { %s576_s27 = sshll.u32 %s183_s26, 4  ;;  %s593_s28 = sshll.u32 %s832_s18, 8 }
  0x33   : > { %s968_s7 = scalar_lea.hbm %s1070_s0, %s593_s28  ;;  %s187_s8 = scalar_lea.vmem [#allocation2], %s576_s27 }
  0x34   : > { %s194_s9 = sshll.u32 %s187_s8, 4  ;;  %p972_p2 = pnand %p635_p3, %p37_p5  ;;  %s970_s9 = int_to_ptr.vmem [resolvable:$true] %s194_s9 }
  0x35   : > { %s976_s11 = scalar_lea.sflag [#allocation3], %s183_s26  ;;  %s736_s12 = scalar_lea.hbm %s968_s7, 256 }
  0x36   : > { %p737_p11 = scmp.ne.s32.totalorder %s968_s7, %s736_s12  ;;  %p738_p7 = pneg %p972_p2 }
  0x37   : > { %s741_s27 = scalar_lea.hbm %s1070_s0, 512  ;;  %p742_p13 = scmp.lt.s32.totalorder %s968_s7, %s1070_s0 }
  0x38   : > { %p739_p9 = pnand %p738_p7, %p737_p11  ;;  %p743_p0 = scmp.lt.s32.totalorder %s741_s27, %s736_s12 }
  0x3a   : > { %p740_p12 = pneg %p739_p9  ;;  %p744_p5 = por %p743_p0, %p742_p13 }
  0x3c   : > { %p745_p3 = pnand %p744_p5, %p740_p12 }
  0x3e   : > { %748 = shalt.err (!%p745_p3)
}
  0x3f   : > { %s749_s26 = scalar_lea.vmem %s970_s9, 256  ;;  %s840_s6 = smov [#allocation2]  }
  0x40   : > { %p750_p1 = scmp.ne.s32.totalorder %s970_s9, %s749_s26  ;;  %s754_s8 = sshll.u32 %s840_s6, 4  ;;  %s755_s8 = int_to_ptr.vmem [resolvable:$false] %s754_s8 }
  0x41   : > { %s756_s14 = scalar_lea.vmem %s755_s8, 512  ;;  %p757_p9 = scmp.lt.s32.totalorder %s970_s9, %s755_s8 }
  0x42   : > { %p752_p6 = pnand %p750_p1, %p738_p7  ;;  %p758_p10 = scmp.lt.s32.totalorder %s756_s14, %s749_s26 }
  0x44   : > { %p753_p11 = pneg %p752_p6  ;;  %p759_p4 = por %p758_p10, %p757_p9 }
  0x46   : > { %p760_p8 = pnand %p759_p4, %p753_p11 }
  0x48   : > { %763 = shalt.err (!%p760_p8)
}
  0x49   : > { %628 = dma.hbm_to_vmem [thread:$0]  (!%p972_p2), %s968_s7, 256, %s970_s9, %s976_s11, %s836_s30, %s836_s30, %s837_s5  }
  0x4a   : > { %p1085_p1 = scmp.ne.s32.totalorder %s1081_s23, 0 }
  0x4b   : > { %s1003_s12 = sand.u32 (!%p1085_p1), 1, %s824_s16   ;;  %p1086_p4 = scmp.ne.s32.totalorder (!%p1085_p1), %s1079_s21, 0 }
  0x4c   : > { %206 = sbr.rel (%p1085_p1) target bundleno = 534 (0x216), region = 36  ;;  %s580_s20 = sshll.u32 (!%p1085_p1), %s1003_s12, 4 }
  0x4d   : > { %s209_s27 = scalar_lea.sflag (!%p1085_p1), [#allocation3], %s1003_s12  ;;  %s212_s28 = scalar_lea.vmem (!%p1085_p1), [#allocation2], %s580_s20 }
  0x51   : > { %807 = dma.done.wait (%p1086_p4), %s209_s27, 256  }
  0x52   : > { %809 = vsyncadd (%p1086_p4), %s209_s27, 4294967040  ;;  %p1087_p6 = scmp.eq.s32.totalorder %s891_s19, 0 }
  0x54   : > { %811 = dma.done.wait (%p1087_p6), [#allocation6], 1280   ;;  %p1088_p8 = pmov %p1087_p6 }
  0x55   : > { %vm249_vm0 = vcmask 130048   ;;  %v246_v0 = vld [vmem:[%s212_s28 + $0x8] sm:$0xff]  ;;  %v245_v1 = vld [vmem:[%s212_s28] sm:$0xff]  ;;  %v841_v12 = vmov 0.0   ;;  %vm351_vm1 = vcmask 261120   ;;  %v341_v15 = vlaneseq  ;;  %s583_s30 = sshll.u32 %s1003_s12, 5 }
  0x56   : > { %813 = vsyncadd (%p1088_p8), [#allocation6], 4294966016  ;;  %v247_v2 = vld [vmem:[#allocation5] sm:$0xff]  ;;  %599 = vmatprep.subr.mxu0 %v246_v0  ;;  %v338_v3 = vld [vmem:[#allocation7 + $0x38] sm:$0xff]  ;;  %422 = vmatprep.mubr.f32.mxu1 %v841_v12  ;;  %s244_s5 = scalar_lea.vmem [#allocation8], %s583_s30  ;;  %s594_s9 = sshll.u32 %s891_s19, 9 }
  0x57   : > { %603 = vmatprep.mubr.msk.f32.mxu0 %vm249_vm0, %v247_v2  ;;  %v337_v4 = vld [vmem:[#allocation7 + $0x30] sm:$0xff]  ;;  %600 = vmatpush3.msra.mxu0 %v246_v0  ;;  %v248_v5 = vld [vmem:[#allocation5 + $0x8] sm:$0xff]  ;;  %v336_v6 = vld [vmem:[#allocation7 + $0x28] sm:$0xff]  ;;  %v342_v16 = vshrl.u32 %v341_v15, 7  ;;  %s479_s7 = sshll.u32 %s244_s5, 4  ;;  %s1027_s29 = scalar_lea.hbm %s1074_s4, %s594_s9  ;;  %s1022_s7 = int_to_ptr.vmem [resolvable:$true] %s479_s7 }
  0x58   : > { %382 = vmatprep.subr.mxu1 %v338_v3  ;;  %v335_v7 = vld [vmem:[#allocation7 + $0x20] sm:$0xff]  ;;  %601 = vmatprep.subr.mxu0 %v245_v1  ;;  %v334_v8 = vld [vmem:[#allocation7 + $0x18] sm:$0xff]  ;;  %v333_v9 = vld [vmem:[#allocation7 + $0x10] sm:$0xff]  ;;  %s466_s19 = scalar_lea.sflag [#allocation4], %s1003_s12  ;;  %s764_s26 = scalar_lea.vmem %s1022_s7, 512 }
  0x59   : > { %383 = vmatpush1.msra.mxu1 %v337_v4  ;;  %602 = vmatpush3.msra.mxu0 %v245_v1  ;;  %v332_v10 = vld [vmem:[#allocation7 + $0x8] sm:$0xff]  ;;  %v331_v11 = vld [vmem:[#allocation7] sm:$0xff]  ;;  %v343_v17 = vsub.s32 0, %v342_v16  ;;  %v339_v18 = vld [vmem:[%s1073_s3] sm:$0x3]  ;;  %v347_v19 = vsub.s32 1, %v342_v16  ;;  %p765_p10 = scmp.ne.s32.totalorder %s1022_s7, %s764_s26 }
  0x5a   : > { %384 = vmatprep.subr.mxu1 %v336_v6  ;;  %604 = vmatmul.mubr.msk.f32.vlgmr.msra.gmra.mxu0 %vm249_vm0, %v248_v5  ;;  %p1089_p2 = scmp.ne.s32.totalorder %s1083_s25, 0  ;;  %s842_s6 = smov [#allocation8]  }
  0x5b   : > { %385 = vmatpush1.msra.mxu1 %v335_v7  ;;  %v344_v20 = vrot.slane %v339_v18, %v343_v17  ;;  %v348_v22 = vrot.slane %v339_v18, %v347_v19  ;;  %s768_s8 = sshll.u32 %s842_s6, 4  ;;  %s769_s8 = int_to_ptr.vmem [resolvable:$false] %s768_s8 }
  0x5c   : > { %386 = vmatprep.subr.mxu1 %v334_v8  ;;  %p766_p7 = pnand %p765_p10, %p1089_p2  ;;  %s770_s14 = scalar_lea.vmem %s769_s8, 1024 }
  0x5d   : > { %387 = vmatpush1.msra.mxu1 %v333_v9  ;;  %p771_p13 = scmp.lt.s32.totalorder %s1022_s7, %s769_s8  ;;  %p772_p0 = scmp.lt.s32.totalorder %s770_s14, %s764_s26 }
  0x5e   : > { %388 = vmatprep.subr.mxu1 %v332_v10  ;;  %p767_p12 = pneg %p766_p7 }
  0x5f   : > { %389 = vmatpush1.msra.mxu1 %v331_v11  ;;  %p773_p5 = por %p772_p0, %p771_p13 }
  0x61   : > { %p774_p3 = pnand %p773_p5, %p767_p12 }
 0x11a   : > { %v605_v13 = vpop.f32.mrf.mxu0 }
 0x11c   : > { %v322_v14 = vpop.f32.mrf.mxu0 }
 0x11d   : > { %586 = vmatmul.mubr.msk.f32.vlgmr.msra.gmra.mxu1 %vm351_vm1, %v322_v14 }
 0x11e   : > { %428 = vmatprep.mubr.f32.mxu1 %v841_v12 }
 0x121   : > { %587 = vmatmul.mubr.msk.f32.gmra.mxu1 %vm351_vm1, %v605_v13 }
 0x1dd   : > { %v424_v21 = vpop.f32.mrf.mxu1 }
 0x1de   : > { %v425_v24 = vadd.f32 %v424_v21, %v344_v20 }
 0x1df   : > { %v426_v23 = vpop.f32.mrf.mxu1 }
 0x1e0   : > { %v427_v26 = vadd.f32 %v426_v23, %v348_v22  ;;  %v435_v29 = vmul.f32 %v425_v24, %v425_v24 }
 0x1e1   : > { %v430_v25 = vpop.f32.mrf.mxu1 }
 0x1e2   : > { %v431_v27 = vadd.f32 %v430_v25, %v344_v20  ;;  %v436_v32 = vmul.f32 %v427_v26, %v427_v26 }
 0x1e3   : > { %v432_v28 = vpop.f32.mrf.mxu1 }
 0x1e4   : > { %v437_v30 = vmul.f32 %v431_v27, %v431_v27  ;;  %v433_v31 = vadd.f32 %v432_v28, %v348_v22 }
 0x1e6   : > { %v439_v33 = vadd.f32 %v437_v30, %v435_v29  ;;  %v438_v34 = vmul.f32 %v433_v31, %v433_v31 }
 0x1e8   : > { %v440_v35 = vrot.slane %v439_v33, 4  ;;  %v446_v36 = vadd.f32 %v438_v34, %v436_v32 }
 0x1ea   : > { %v441_v37 = vadd.f32 %v440_v35, %v439_v33  ;;  %v447_v38 = vrot.slane %v446_v36, 4 }
 0x1ec   : > { %v442_v39 = vrot.slane %v441_v37, 2  ;;  %v448_v40 = vadd.f32 %v447_v38, %v446_v36 }
 0x1ee   : > { %v443_v41 = vadd.f32 %v442_v39, %v441_v37  ;;  %v449_v42 = vrot.slane %v448_v40, 2 }
 0x1f0   : > { %v444_v43 = vrot.slane %v443_v41, 1  ;;  %v450_v44 = vadd.f32 %v449_v42, %v448_v40 }
 0x1f2   : > { %v445_v45 = vadd.f32 %v444_v43, %v443_v41  ;;  %v451_v46 = vrot.slane %v450_v44, 1 }
 0x1f4   : > { %v453_v47 = vmax.f32 %v445_v45, 1e-24  ;;  %v452_v48 = vadd.f32 %v451_v46, %v450_v44 }
 0x1f6   : > { %680 = vrsqrt.f32 %v453_v47  ;;  %v454_v49 = vmax.f32 %v452_v48, 1e-24 }
 0x1f8   : > { %682 = vrsqrt.f32 %v454_v49 }
 0x203   : > { %v681_v50 = vpop.eup %680 }
 0x204   : > { %v457_v51 = vmul.f32 %v681_v50, %v425_v24  ;;  %v459_v52 = vmul.f32 %v681_v50, %v431_v27 }
 0x205   : > { %v683_v53 = vpop.eup %682 }
 0x206   : > { %461 = vst [vmem:[%s244_s5] sm:$0xff] %v457_v51  ;;  %463 = vst [vmem:[%s244_s5 + $0x10] sm:$0xff] %v459_v52  ;;  %v458_v54 = vmul.f32 %v683_v53, %v427_v26  ;;  %v460_v55 = vmul.f32 %v683_v53, %v433_v31 }
 0x208   : > { %464 = vst [vmem:[%s244_s5 + $0x18] sm:$0xff] %v460_v55  ;;  %462 = vst [vmem:[%s244_s5 + $0x8] sm:$0xff] %v458_v54 }
 0x209   : > { %777 = shalt.err (!%p774_p3)
}
 0x20a   : > { %s778_s20 = scalar_lea.hbm %s1027_s29, 512  ;;  %s782_s21 = scalar_lea.hbm %s1074_s4, 1024 }
 0x20b   : > { %p779_p11 = scmp.ne.s32.totalorder %s1027_s29, %s778_s20  ;;  %p783_p4 = scmp.lt.s32.totalorder %s1027_s29, %s1074_s4 }
 0x20c   : > { %p784_p6 = scmp.lt.s32.totalorder %s782_s21, %s778_s20 }
 0x20d   : > { %p780_p9 = pnand %p779_p11, %p1089_p2 }
 0x20e   : > { %p785_p8 = por %p784_p6, %p783_p4 }
 0x20f   : > { %p781_p1 = pneg %p780_p9 }
 0x211   : > { %p786_p10 = pnand %p785_p8, %p781_p1 }
 0x213   : > { %789 = shalt.err (!%p786_p10)
}
 0x214   : > { %s843_s5 = smov 256   ;;  %s844_s9 = smov 16  }
 0x215   : > { %616 = dma.vmem_to_hbm [thread:$0]  (%p1089_p2), %s1022_s7, 512, %s1027_s29, %s466_s19, %s843_s5, %s843_s5, %s844_s9  }
 0x216 PF: > { %s494_s10 = sand.u32 1, %s820_s15   ;;  %p1090_p7 = scmp.ne.s32.totalorder %s1080_s22, 0 }
 0x217   : > { %p1091_p12 = scmp.ge.s32.totalorder %s832_s18, 2  ;;  %s495_s11 = scalar_lea.sflag [#allocation4], %s494_s10 }
 0x219   : > { %p630_p13 = pnand %p1091_p12, %p1090_p7 }
 0x21b   : > { %p631_p0 = pneg %p630_p13 }
 0x21d   : > { %815 = dma.done.wait (%p631_p0), %s495_s11, 512  }
 0x21e   : > { %817 = vsyncadd (%p631_p0), %s495_s11, 4294966784  ;;  %p18_p5 = scmp.ge.s32.totalorder %s945_s13, 4   ;;  %s1092_s15 = smov %s824_s16 }
 0x21f   : > { %s1093_s16 = smov %s828_s17  ;;  %s1094_s17 = smov %s954_s24 }
 0x220   : > { %s1095_s18 = smov %s945_s13  ;;  %20 = sbr.rel (!%p18_p5) target bundleno = 6 (0x6), region = 89 }
 0x225   :  { %500 = vsyncpa [#allocation3], 1 }
 0x226   :  { %502 = vsyncpa [#allocation3 + $0x1], 1 }
 0x227   :  { %503 = vsyncpa [#allocation6], 1 }
 0x228   :  { %504 = vsyncpa [#allocation4], 1 }
 0x229   :  { %506 = vsyncpa [#allocation4 + $0x1], 1 }

</bundles_post_ra>
